<compile_context>
chip_gen: v7x
topology: tpu7x:2x2x1
jax: 0.10.0
libtpu: 0.0.40
codegen_flags: <defaults>
</compile_context>

<pallas_src>
import jax
import jax.numpy as jnp
import numpy as np
from jax.experimental import pallas as pl
from jax.experimental.pallas import tpu as pltpu

B = 8                                # batch
EMBED = 32                           # embed_dim
HEADS = 4                            # head_num
HEAD_DIM = EMBED // HEADS            # 8
HEAD_SQ = HEAD_DIM * HEAD_DIM        # 64
HEAD_PAD = 128                       # per-head lane block, padded to one vreg width
NEXPP = HEADS * HEAD_PAD             # 512  (padded expanded width per q/k/v)
QKV_W = 3 * NEXPP                    # 1536
HIDDEN = 64                          # FeedForward hidden_dim
EPS = 1e-6
SCALE = 1.0 / float(np.sqrt(HEAD_DIM))


def self_attention_kernel(x_ref, qkv_ref, ff_ref, o_ref):
    x = x_ref[...]                                        # (B, E)

    # --- fused, pre-expanded QKV projection: one (B,E)@(E,1536) matmul ---------
    # lane h*128 + i*D + j of the q block holds q[b,i,h]; of the k/v blocks holds
    # k[b,j,h] / v[b,j,h]; lanes 64..127 of each head block are zero padding.
    w_qkv = qkv_ref[0:EMBED, :]                           # (E, 1536) static ref view
    b_qkv = qkv_ref[EMBED:EMBED + 1, :]                   # (1, 1536)
    qkv = jnp.dot(x, w_qkv, preferred_element_type=jnp.float32) + b_qkv

    q_big = qkv[:, 0:NEXPP]                               # (B, 512)
    k_big = qkv[:, NEXPP:2 * NEXPP]
    v_big = qkv[:, 2 * NEXPP:3 * NEXPP]

    # --- scores: A[b, i*D+j] = sum_h q[b,i,h]*k[b,j,h] / sqrt(D) ----------------
    prod = q_big * k_big                                  # (B, 512)
    a = (prod[:, 0:HEAD_PAD] + prod[:, HEAD_PAD:2 * HEAD_PAD]
         + prod[:, 2 * HEAD_PAD:3 * HEAD_PAD] + prod[:, 3 * HEAD_PAD:4 * HEAD_PAD])
    a = a * SCALE                                         # (B, 128); lanes 64..127 are 0

    # PyTorch F.softmax with no dim on a 3-D tensor -> softmax over dim 0 (batch).
    # Padding lanes are all-zero -> softmax there is a harmless constant 1/B.
    m = jnp.max(a, axis=0, keepdims=True)
    e = jnp.exp(a - m)
    inv = 1.0 / jnp.sum(e, axis=0, keepdims=True)         # one exact recip per lane
    a = e * inv                                           # (B, 128)

    # --- AV + interleaved flatten + linear1 + linear2, all in ONE K=512 matmul --
    # att[b,i,h] = sum_j A[b,i,j] v[b,j,h]; the j-sum, the (i*H+h) flatten and the
    # (activation-free) FeedForward are absorbed into p @ w_ff with the folded,
    # permuted, padded weight w_ff = w1s @ W2^T prepared in glue.
    # TODO(synk): dropout layers are treated as identity (eval mode).
    a_big = jnp.concatenate([a, a, a, a], axis=1)         # (B, 512) aligned vreg copies
    p = a_big * v_big                                     # (B, 512)

    w_ff = ff_ref[0:NEXPP, :]                             # (512, E) static ref view
    params = ff_ref[NEXPP:NEXPP + 3, :]                   # (3, E): b_ff | alpha | beta
    b_ff = params[0:1, :]
    alpha = params[1:2, :]
    beta = params[2:3, :]
    y = jnp.dot(p, w_ff, preferred_element_type=jnp.float32) + b_ff      # (B, E)

    # --- LayerNorm (PyTorch reference: unbiased std, divide by (std + eps)) -----
    mean = jnp.sum(y, axis=-1, keepdims=True) * (1.0 / EMBED)
    yc = y - mean
    var = jnp.sum(yc * yc, axis=-1, keepdims=True) * (1.0 / (EMBED - 1))
    inv_std = 1.0 / (jnp.sqrt(var) + EPS)                 # one exact recip per row
    o_ref[...] = alpha * yc * inv_std + beta


# ----------------------------- glue (runs once) ---------------------------------

def _expand_qkv(Ww, bw):
    """Expand fused QKV weights so lane h*128 + i*D + j of the projection output holds
    q[b,i,h] / k[b,j,h] / v[b,j,h]; lanes 64..127 of each head block are zero."""
    wwt = Ww.T                                            # (E, 3E)
    qw, kw, vw = wwt[:, :EMBED], wwt[:, EMBED:2 * EMBED], wwt[:, 2 * EMBED:]
    qb, kb, vb = bw[:EMBED], bw[EMBED:2 * EMBED], bw[2 * EMBED:]
    pad = HEAD_PAD - HEAD_SQ

    def expand_w(w, depends_on_i):
        w3 = w.reshape(EMBED, HEADS, HEAD_DIM)            # [in, h, i_or_j]
        if depends_on_i:                                  # q: value indexed by i, j fast
            w4 = jnp.broadcast_to(w3[:, :, :, None], (EMBED, HEADS, HEAD_DIM, HEAD_DIM))
        else:                                             # k/v: value indexed by j, i slow
            w4 = jnp.broadcast_to(w3[:, :, None, :], (EMBED, HEADS, HEAD_DIM, HEAD_DIM))
        w4 = w4.reshape(EMBED, HEADS, HEAD_SQ)
        w4 = jnp.pad(w4, ((0, 0), (0, 0), (0, pad)))
        return w4.reshape(EMBED, NEXPP)

    def expand_b(b, depends_on_i):
        b3 = b.reshape(HEADS, HEAD_DIM)
        if depends_on_i:
            b4 = jnp.broadcast_to(b3[:, :, None], (HEADS, HEAD_DIM, HEAD_DIM))
        else:
            b4 = jnp.broadcast_to(b3[:, None, :], (HEADS, HEAD_DIM, HEAD_DIM))
        b4 = b4.reshape(HEADS, HEAD_SQ)
        b4 = jnp.pad(b4, ((0, 0), (0, pad)))
        return b4.reshape(NEXPP)

    W_exp = jnp.concatenate(
        [expand_w(qw, True), expand_w(kw, False), expand_w(vw, False)], axis=1)  # (E, 1536)
    b_exp = jnp.concatenate(
        [expand_b(qb, True), expand_b(kb, False), expand_b(vb, False)])          # (1536,)
    return W_exp, b_exp


def _fold_ff(W1, b1, W2, b2):
    """Fold linear1+linear2 (no activation, dropout=identity) and absorb the AV j-sum
    and the interleaved (i*H+h) flatten: row h*128 + i*D + j of w_ff = W1^T[i*H+h] @ W2^T."""
    # w1p[h, i, :] = W1^T[i*HEADS + h, :]
    w1p = W1.T.reshape(HEAD_DIM, HEADS, HIDDEN).transpose(1, 0, 2)       # (H, D, HIDDEN)
    w1r = jnp.broadcast_to(w1p[:, :, None, :], (HEADS, HEAD_DIM, HEAD_DIM, HIDDEN))
    w1r = w1r.reshape(HEADS, HEAD_SQ, HIDDEN)
    w1r = jnp.pad(w1r, ((0, 0), (0, HEAD_PAD - HEAD_SQ), (0, 0)))
    w1s = w1r.reshape(NEXPP, HIDDEN)                                     # (512, HIDDEN)
    w_ff = w1s @ W2.T                                                    # (512, E)
    b_ff = b1 @ W2.T + b2                                                # (E,)
    return w_ff, b_ff


def self_attention(x, Ww, bw, W1, b1, W2, b2, alpha, beta):
    W_exp, b_exp = _expand_qkv(Ww, bw)
    w_ff, b_ff = _fold_ff(W1, b1, W2, b2)

    # Two weight slabs -> 3 input DMAs total (x, qkv_slab, ff_slab).
    qkv_slab = jnp.concatenate([W_exp, b_exp[None, :]], axis=0)          # (33, 1536)
    params = jnp.stack([b_ff, alpha, beta], axis=0)                      # (3, E)
    ff_slab = jnp.concatenate([w_ff, params], axis=0)                    # (515, E)

    vmem = lambda: pl.BlockSpec(memory_space=pltpu.MemorySpace.VMEM)
    return pl.pallas_call(
        self_attention_kernel,
        out_shape=jax.ShapeDtypeStruct((B, EMBED), jnp.float32),
        in_specs=[vmem(), vmem(), vmem()],
        out_specs=vmem(),
    )(x, qkv_slab, ff_slab)


def reference(x, Ww, bw, W1, b1, W2, b2, alpha, beta):
    """Pure-JAX replica of the PyTorch forward (eval mode) for validation."""
    W = x @ Ww.T + bw
    q, k, v = W[:, :EMBED], W[:, EMBED:2 * EMBED], W[:, 2 * EMBED:]
    q = q.reshape(B, HEADS, HEAD_DIM).transpose(0, 2, 1)
    k = k.reshape(B, HEADS, HEAD_DIM).transpose(0, 2, 1)
    v = v.reshape(B, HEADS, HEAD_DIM).transpose(0, 2, 1)
    A = jnp.einsum('bih,bjh->bij', q, k) / jnp.sqrt(jnp.float32(HEAD_DIM))
    A = jax.nn.softmax(A, axis=0)                     # PyTorch F.softmax default dim for 3-D
    out = jnp.einsum('bij,bjh->bih', A, v)
    att = out.reshape(B, EMBED)
    hidden = att @ W1.T + b1
    y = hidden @ W2.T + b2
    mean = y.mean(-1, keepdims=True)
    std = jnp.sqrt(((y - mean) ** 2).sum(-1, keepdims=True) / (EMBED - 1))
    return alpha * (y - mean) / (std + EPS) + beta


if __name__ == "__main__":
    key = jax.random.PRNGKey(0)
    ks = jax.random.split(key, 7)
    Ww = jax.random.normal(ks[0], (3 * EMBED, EMBED), jnp.float32) * 0.1
    bw = jax.random.normal(ks[1], (3 * EMBED,), jnp.float32) * 0.1
    W1 = jax.random.normal(ks[2], (HIDDEN, EMBED), jnp.float32) * 0.1
    b1 = jax.random.normal(ks[3], (HIDDEN,), jnp.float32) * 0.1
    W2 = jax.random.normal(ks[4], (EMBED, HIDDEN), jnp.float32) * 0.1
    b2 = jax.random.normal(ks[5], (EMBED,), jnp.float32) * 0.1
    alpha = jnp.ones((EMBED,), jnp.float32)   # LayerNorm alpha init
    beta = jnp.zeros((EMBED,), jnp.float32)   # LayerNorm bias init
    x = jax.random.normal(ks[6], (B, EMBED), jnp.float32)

    out = self_attention(x, Ww, bw, W1, b1, W2, b2, alpha, beta)
    out = jax.block_until_ready(out)

    ref = reference(x, Ww, bw, W1, b1, W2, b2, alpha, beta)
    np.testing.assert_allclose(np.asarray(out), np.asarray(ref), rtol=1e-4, atol=1e-4)
    print("KERNEL_OK")
</pallas_src>

<mosaic_0001>
module attributes {stable_mosaic.version = 11 : i64} {
  func.func @self_attention_kernel(%arg0: memref<8x32xf32, #tpu.memory_space<vmem>>, %arg1: memref<33x1536xf32, #tpu.memory_space<vmem>>, %arg2: memref<515x32xf32, #tpu.memory_space<vmem>>, %arg3: memref<8x32xf32, #tpu.memory_space<vmem>>) attributes {dimension_semantics = [], scalar_prefetch = 0 : i64, scratch_operands = 0 : i64, tpu.core_type = #tpu.core_type<tc>} {
    %c0 = arith.constant 0 : index
    %c0_0 = arith.constant 0 : index
    %0 = vector.load %arg0[%c0, %c0_0] : memref<8x32xf32, #tpu.memory_space<vmem>>, vector<8x32xf32>
    %c0_1 = arith.constant 0 : index
    %c0_2 = arith.constant 0 : index
    %1 = vector.load %arg1[%c0_1, %c0_2] : memref<33x1536xf32, #tpu.memory_space<vmem>>, vector<32x1536xf32>
    %c32 = arith.constant 32 : index
    %c0_3 = arith.constant 0 : index
    %2 = vector.load %arg1[%c32, %c0_3] : memref<33x1536xf32, #tpu.memory_space<vmem>>, vector<1x1536xf32>
    %cst = arith.constant dense<0.000000e+00> : vector<8x1536xf32>
    %3 = tpu.matmul %0, %1, %cst {dimension_numbers = #tpu.dot_dimension_numbers<[1], [0], [0], [1], [0, 0, 1, 1], [], []>} : vector<8x32xf32>, vector<32x1536xf32>, vector<8x1536xf32> -> vector<8x1536xf32>
    %4 = vector.broadcast %2 : vector<1x1536xf32> to vector<8x1536xf32>
    %5 = arith.addf %3, %4 : vector<8x1536xf32>
    %6 = vector.extract_strided_slice %5 {offsets = [0, 0], sizes = [8, 512], strides = [1, 1]} : vector<8x1536xf32> to vector<8x512xf32>
    %7 = vector.extract_strided_slice %5 {offsets = [0, 512], sizes = [8, 512], strides = [1, 1]} : vector<8x1536xf32> to vector<8x512xf32>
    %8 = vector.extract_strided_slice %5 {offsets = [0, 1024], sizes = [8, 512], strides = [1, 1]} : vector<8x1536xf32> to vector<8x512xf32>
    %9 = arith.mulf %6, %7 : vector<8x512xf32>
    %10 = vector.extract_strided_slice %9 {offsets = [0, 0], sizes = [8, 128], strides = [1, 1]} : vector<8x512xf32> to vector<8x128xf32>
    %11 = vector.extract_strided_slice %9 {offsets = [0, 128], sizes = [8, 128], strides = [1, 1]} : vector<8x512xf32> to vector<8x128xf32>
    %12 = arith.addf %10, %11 : vector<8x128xf32>
    %13 = vector.extract_strided_slice %9 {offsets = [0, 256], sizes = [8, 128], strides = [1, 1]} : vector<8x512xf32> to vector<8x128xf32>
    %14 = arith.addf %12, %13 : vector<8x128xf32>
    %15 = vector.extract_strided_slice %9 {offsets = [0, 384], sizes = [8, 128], strides = [1, 1]} : vector<8x512xf32> to vector<8x128xf32>
    %16 = arith.addf %14, %15 : vector<8x128xf32>
    %cst_4 = arith.constant 0.353553385 : f32
    %17 = vector.broadcast %cst_4 : f32 to vector<8x128xf32>
    %18 = arith.mulf %16, %17 : vector<8x128xf32>
    %cst_5 = arith.constant dense<0xFF800000> : vector<128xf32>
    %19 = vector.multi_reduction <maximumf>, %18, %cst_5 [0] : vector<8x128xf32> to vector<128xf32>
    %20 = vector.shape_cast %19 : vector<128xf32> to vector<1x128xf32>
    %21 = vector.broadcast %20 : vector<1x128xf32> to vector<8x128xf32>
    %22 = arith.subf %18, %21 : vector<8x128xf32>
    %23 = math.exp %22 : vector<8x128xf32>
    %cst_6 = arith.constant dense<0.000000e+00> : vector<128xf32>
    %24 = vector.multi_reduction <add>, %23, %cst_6 [0] : vector<8x128xf32> to vector<128xf32>
    %25 = vector.shape_cast %24 : vector<128xf32> to vector<1x128xf32>
    %cst_7 = arith.constant 1.000000e+00 : f32
    %26 = vector.broadcast %cst_7 : f32 to vector<1x128xf32>
    %27 = arith.divf %26, %25 : vector<1x128xf32>
    %28 = vector.broadcast %27 : vector<1x128xf32> to vector<8x128xf32>
    %29 = arith.mulf %23, %28 : vector<8x128xf32>
    %30 = tpu.concatenate %29, %29, %29, %29 in 1 : vector<8x128xf32>, vector<8x128xf32>, vector<8x128xf32>, vector<8x128xf32> -> vector<8x512xf32>
    %31 = arith.mulf %30, %8 : vector<8x512xf32>
    %c0_8 = arith.constant 0 : index
    %c0_9 = arith.constant 0 : index
    %32 = vector.load %arg2[%c0_8, %c0_9] : memref<515x32xf32, #tpu.memory_space<vmem>>, vector<512x32xf32>
    %c512 = arith.constant 512 : index
    %c0_10 = arith.constant 0 : index
    %33 = vector.load %arg2[%c512, %c0_10] : memref<515x32xf32, #tpu.memory_space<vmem>>, vector<3x32xf32>
    %34 = vector.extract_strided_slice %33 {offsets = [0, 0], sizes = [1, 32], strides = [1, 1]} : vector<3x32xf32> to vector<1x32xf32>
    %35 = vector.extract_strided_slice %33 {offsets = [1, 0], sizes = [1, 32], strides = [1, 1]} : vector<3x32xf32> to vector<1x32xf32>
    %36 = vector.extract_strided_slice %33 {offsets = [2, 0], sizes = [1, 32], strides = [1, 1]} : vector<3x32xf32> to vector<1x32xf32>
    %cst_11 = arith.constant dense<0.000000e+00> : vector<8x32xf32>
    %37 = tpu.matmul %31, %32, %cst_11 {dimension_numbers = #tpu.dot_dimension_numbers<[1], [0], [0], [1], [0, 0, 1, 1], [], []>} : vector<8x512xf32>, vector<512x32xf32>, vector<8x32xf32> -> vector<8x32xf32>
    %38 = vector.broadcast %34 : vector<1x32xf32> to vector<8x32xf32>
    %39 = arith.addf %37, %38 : vector<8x32xf32>
    %cst_12 = arith.constant dense<0.000000e+00> : vector<8xf32>
    %40 = vector.multi_reduction <add>, %39, %cst_12 [1] : vector<8x32xf32> to vector<8xf32>
    %41 = vector.shape_cast %40 : vector<8xf32> to vector<8x1xf32>
    %cst_13 = arith.constant 3.125000e-02 : f32
    %42 = vector.broadcast %cst_13 : f32 to vector<8x1xf32>
    %43 = arith.mulf %41, %42 : vector<8x1xf32>
    %44 = vector.broadcast %43 : vector<8x1xf32> to vector<8x32xf32>
    %45 = arith.subf %39, %44 : vector<8x32xf32>
    %46 = arith.mulf %45, %45 : vector<8x32xf32>
    %cst_14 = arith.constant dense<0.000000e+00> : vector<8xf32>
    %47 = vector.multi_reduction <add>, %46, %cst_14 [1] : vector<8x32xf32> to vector<8xf32>
    %48 = vector.shape_cast %47 : vector<8xf32> to vector<8x1xf32>
    %cst_15 = arith.constant 0.0322580636 : f32
    %49 = vector.broadcast %cst_15 : f32 to vector<8x1xf32>
    %50 = arith.mulf %48, %49 : vector<8x1xf32>
    %51 = math.sqrt %50 : vector<8x1xf32>
    %cst_16 = arith.constant 9.99999997E-7 : f32
    %52 = vector.broadcast %cst_16 : f32 to vector<8x1xf32>
    %53 = arith.addf %51, %52 : vector<8x1xf32>
    %cst_17 = arith.constant 1.000000e+00 : f32
    %54 = vector.broadcast %cst_17 : f32 to vector<8x1xf32>
    %55 = arith.divf %54, %53 : vector<8x1xf32>
    %56 = vector.broadcast %35 : vector<1x32xf32> to vector<8x32xf32>
    %57 = arith.mulf %56, %45 : vector<8x32xf32>
    %58 = vector.broadcast %55 : vector<8x1xf32> to vector<8x32xf32>
    %59 = arith.mulf %57, %58 : vector<8x32xf32>
    %60 = vector.broadcast %36 : vector<1x32xf32> to vector<8x32xf32>
    %61 = arith.addf %59, %60 : vector<8x32xf32>
    %c0_18 = arith.constant 0 : index
    %c0_19 = arith.constant 0 : index
    %62 = vector.load %arg3[%c0_18, %c0_19] : memref<8x32xf32, #tpu.memory_space<vmem>>, vector<8x32xf32>
    tpu.vector_store %arg3[%c0_18, %c0_19], %61 {strides = array<i32>} : memref<8x32xf32, #tpu.memory_space<vmem>>, vector<8x32xf32>,
    return
  }
}

</mosaic_0001>

<bundles_post_ra>
// kernel: tpu_custom_call.1
= control target key start
LH: loop header
LB: loop body
LE: loop exit
PB: predicated region body
PF: predicated region fallthrough
CT: control target
= control target key end

     0   :  { %v1072_v7 = vmov 0.0   ;;  %vm132_vm0 = vcmask 261120   ;;  %s1505_s0 = inlined_call_operand.vmem [shape: f32[8,32], index: 0, kind: input, shape index: {}]   ;;  %s1506_s1 = inlined_call_operand.vmem [shape: f32[33,1536], index: 1, kind: input, shape index: {}]   ;;  %s1507_s2 = inlined_call_operand.vmem [shape: f32[515,32], index: 2, kind: input, shape index: {}]   ;;  %s1508_s3 = inlined_call_operand.hbm [shape: f32[8,32], index: 3, kind: output, shape index: {}]  }
   0x1   :  { %v17_v0 = vld [vmem:[%s1506_s1 + $0x8] sm:$0xff]  ;;  %v19_v2 = vld [vmem:[%s1506_s1 + $0x18] sm:$0xff]  ;;  %v16_v5 = vld [vmem:[%s1506_s1] sm:$0xff]  ;;  %200 = vmatprep.mubr.f32.mxu0 %v1072_v7  ;;  %271 = vmatprep.mubr.f32.mxu1 %v1072_v7 }
   0x2   :  { %v29_v1 = vld [vmem:[%s1506_s1 + $0x68] sm:$0xff]  ;;  %v31_v4 = vld [vmem:[%s1506_s1 + $0x78] sm:$0xff]  ;;  %v28_v6 = vld [vmem:[%s1506_s1 + $0x60] sm:$0xff] }
   0x3   :  { %v926_v3 = vpack.c.bf16 %v29_v1, %v17_v0  ;;  %v934_v8 = vpack.c.bf16 %v31_v4, %v19_v2  ;;  %v928_v9 = vpack.c.bf16 %v28_v6, %v16_v5  ;;  %v18_v10 = vld [vmem:[%s1506_s1 + $0x10] sm:$0xff]  ;;  %v41_v12 = vld [vmem:[%s1506_s1 + $0xc8] sm:$0xff]  ;;  %v43_v15 = vld [vmem:[%s1506_s1 + $0xd8] sm:$0xff] }
   0x4   :  { %v30_v11 = vld [vmem:[%s1506_s1 + $0x70] sm:$0xff]  ;;  %v53_v14 = vld [vmem:[%s1506_s1 + $0x128] sm:$0xff]  ;;  %v55_v16 = vld [vmem:[%s1506_s1 + $0x138] sm:$0xff] }
   0x5   :  { %927 = vmatprep.subr.bf16.mxu0 %v926_v3  ;;  %v936_v13 = vpack.c.bf16 %v30_v11, %v18_v10  ;;  %935 = vmatprep.subr.bf16.mxu1 %v934_v8  ;;  %v930_v17 = vpack.c.bf16 %v53_v14, %v41_v12  ;;  %v938_v18 = vpack.c.bf16 %v55_v16, %v43_v15  ;;  %v40_v19 = vld [vmem:[%s1506_s1 + $0xc0] sm:$0xff]  ;;  %v42_v21 = vld [vmem:[%s1506_s1 + $0xd0] sm:$0xff]  ;;  %v21_v24 = vld [vmem:[%s1506_s1 + $0x28] sm:$0xff] }
   0x6   :  { %929 = vmatpush1.bf16.msra.mxu0 %v928_v9  ;;  %v52_v20 = vld [vmem:[%s1506_s1 + $0x120] sm:$0xff]  ;;  %v54_v23 = vld [vmem:[%s1506_s1 + $0x130] sm:$0xff]  ;;  %v33_v27 = vld [vmem:[%s1506_s1 + $0x88] sm:$0xff] }
   0x7   :  { %937 = vmatpush1.bf16.msra.mxu1 %v936_v13  ;;  %v932_v22 = vpack.c.bf16 %v52_v20, %v40_v19  ;;  %931 = vmatprep.subr.bf16.mxu0 %v930_v17  ;;  %v940_v25 = vpack.c.bf16 %v54_v23, %v42_v21  ;;  %v1150_v26 = vld [vmem:[%s1505_s0] sm:$0xff]  ;;  %v23_v28 = vld [vmem:[%s1506_s1 + $0x38] sm:$0xff]  ;;  %v942_v30 = vpack.c.bf16 %v33_v27, %v21_v24  ;;  %v22_v34 = vld [vmem:[%s1506_s1 + $0x30] sm:$0xff] }
   0x8   :  { %939 = vmatprep.subr.bf16.mxu1 %v938_v18  ;;  %v35_v29 = vld [vmem:[%s1506_s1 + $0x98] sm:$0xff]  ;;  %v20_v32 = vld [vmem:[%s1506_s1 + $0x20] sm:$0xff]  ;;  %v34_v36 = vld [vmem:[%s1506_s1 + $0x90] sm:$0xff] }
   0x9   :  { %v950_v31 = vpack.c.bf16 %v35_v29, %v23_v28  ;;  %v32_v33 = vld [vmem:[%s1506_s1 + $0x80] sm:$0xff]  ;;  %v45_v37 = vld [vmem:[%s1506_s1 + $0xe8] sm:$0xff]  ;;  %v952_v39 = vpack.c.bf16 %v34_v36, %v22_v34  ;;  %v47_v41 = vld [vmem:[%s1506_s1 + $0xf8] sm:$0xff] }
   0xa   :  { %933 = vmatpush1.bf16.msra.mxu0 %v932_v22  ;;  %v944_v35 = vpack.c.bf16 %v32_v33, %v20_v32  ;;  %v57_v38 = vld [vmem:[%s1506_s1 + $0x148] sm:$0xff]  ;;  %v59_v42 = vld [vmem:[%s1506_s1 + $0x158] sm:$0xff]  ;;  %v44_v43 = vld [vmem:[%s1506_s1 + $0xe0] sm:$0xff] }
   0xb   :  { %941 = vmatpush1.bf16.msra.mxu1 %v940_v25  ;;  %943 = vmatprep.subr.bf16.mxu0 %v942_v30  ;;  %v946_v40 = vpack.c.bf16 %v57_v38, %v45_v37  ;;  %v954_v44 = vpack.c.bf16 %v59_v42, %v47_v41  ;;  %v56_v45 = vld [vmem:[%s1506_s1 + $0x140] sm:$0xff]  ;;  %v46_v46 = vld [vmem:[%s1506_s1 + $0xf0] sm:$0xff]  ;;  %v25_v48 = vld [vmem:[%s1506_s1 + $0x48] sm:$0xff] }
   0xc   :  { %951 = vmatprep.subr.bf16.mxu1 %v950_v31  ;;  %v58_v47 = vld [vmem:[%s1506_s1 + $0x150] sm:$0xff]  ;;  %v37_v49 = vld [vmem:[%s1506_s1 + $0xa8] sm:$0xff]  ;;  %v948_v50 = vpack.c.bf16 %v56_v45, %v44_v43  ;;  %v27_v51 = vld [vmem:[%s1506_s1 + $0x58] sm:$0xff] }
   0xd   :  { %850 = vmatmul.mubr.msk.f32.vlgmr.msra.gmra.mrb[0].mxu0 %vm132_vm0, %v1150_v26  ;;  %v39_v52 = vld [vmem:[%s1506_s1 + $0xb8] sm:$0xff]  ;;  %v956_v53 = vpack.c.bf16 %v58_v47, %v46_v46  ;;  %v958_v54 = vpack.c.bf16 %v37_v49, %v25_v48  ;;  %v24_v55 = vld [vmem:[%s1506_s1 + $0x40] sm:$0xff]  ;;  %v26_v57 = vld [vmem:[%s1506_s1 + $0x50] sm:$0xff] }
   0xe   :  { %851 = vmatmul.mubr.msk.f32.vlgmr.msra.gmra.mrb[0].mxu1 %vm132_vm0, %v1150_v26  ;;  %945 = vmatpush1.bf16.msra.mxu0 %v944_v35  ;;  %v36_v56 = vld [vmem:[%s1506_s1 + $0xa0] sm:$0xff]  ;;  %v966_v58 = vpack.c.bf16 %v39_v52, %v27_v51  ;;  %v38_v59 = vld [vmem:[%s1506_s1 + $0xb0] sm:$0xff]  ;;  %v49_v60 = vld [vmem:[%s1506_s1 + $0x108] sm:$0xff] }
   0xf   :  { %953 = vmatpush1.bf16.msra.mxu1 %v952_v39  ;;  %947 = vmatprep.subr.bf16.mxu0 %v946_v40  ;;  %v61_v61 = vld [vmem:[%s1506_s1 + $0x168] sm:$0xff]  ;;  %v51_v62 = vld [vmem:[%s1506_s1 + $0x118] sm:$0xff]  ;;  %v960_v0 = vpack.c.bf16 %v36_v56, %v24_v55 }
  0x10   :  { %955 = vmatprep.subr.bf16.mxu1 %v954_v44  ;;  %342 = vmatprep.mubr.f32.mxu0 %v1072_v7  ;;  %v63_v63 = vld [vmem:[%s1506_s1 + $0x178] sm:$0xff] }
  0x11   :  { %413 = vmatprep.mubr.f32.mxu1 %v1072_v7 }
  0x12   :  { %949 = vmatpush1.bf16.msra.mxu0 %v948_v50 }
  0x13   :  { %8 = vsyncpa [#allocation3], 0  ;;  %957 = vmatpush1.bf16.msra.mxu1 %v956_v53  ;;  %959 = vmatprep.subr.bf16.mxu0 %v958_v54  ;;  %v968_v1 = vpack.c.bf16 %v38_v59, %v26_v57  ;;  %v962_v2 = vpack.c.bf16 %v61_v61, %v49_v60  ;;  %v48_v3 = vld [vmem:[%s1506_s1 + $0x100] sm:$0xff]  ;;  %v970_v5 = vpack.c.bf16 %v63_v63, %v51_v62  ;;  %v50_v6 = vld [vmem:[%s1506_s1 + $0x110] sm:$0xff] }
  0x14   :  { %v60_v4 = vld [vmem:[%s1506_s1 + $0x160] sm:$0xff]  ;;  %967 = vmatprep.subr.bf16.mxu1 %v966_v58  ;;  %v62_v8 = vld [vmem:[%s1506_s1 + $0x170] sm:$0xff]  ;;  %v609_v12 = vld [vmem:[%s1507_s2 + $0x88] sm:$0xff] }
  0x15   :  { %852 = vmatmul.mubr.msk.f32.vlgmr.msra.gmra.mrb[2].mxu0 %vm132_vm0, %v1150_v26  ;;  %v964_v9 = vpack.c.bf16 %v60_v4, %v48_v3  ;;  %v972_v10 = vpack.c.bf16 %v62_v8, %v50_v6  ;;  %v608_v11 = vld [vmem:[%s1507_s2 + $0x80] sm:$0xff]  ;;  %v641_v14 = vld [vmem:[%s1507_s2 + $0x188] sm:$0xff]  ;;  %v610_v21 = vld [vmem:[%s1507_s2 + $0x90] sm:$0xff] }
  0x16   :  { %853 = vmatmul.mubr.msk.f32.vlgmr.msra.gmra.mrb[2].mxu1 %vm132_vm0, %v1150_v26  ;;  %961 = vmatpush1.bf16.msra.mxu0 %v960_v0  ;;  %v974_v13 = vpack.c.bf16 %v609_v12, %v608_v11  ;;  %v592_v15 = vld [vmem:[%s1507_s2] sm:$0xff]  ;;  %v593_v16 = vld [vmem:[%s1507_s2 + $0x8] sm:$0xff]  ;;  %v611_v23 = vld [vmem:[%s1507_s2 + $0x98] sm:$0xff] }
  0x17   :  { %969 = vmatpush1.bf16.msra.mxu1 %v968_v1  ;;  %963 = vmatprep.subr.bf16.mxu0 %v962_v2  ;;  %v976_v18 = vpack.c.bf16 %v593_v16, %v592_v15  ;;  %v624_v19 = vld [vmem:[%s1507_s2 + $0x100] sm:$0xff]  ;;  %v625_v20 = vld [vmem:[%s1507_s2 + $0x108] sm:$0xff]  ;;  %v642_v24 = vld [vmem:[%s1507_s2 + $0x190] sm:$0xff] }
  0x18   :  { %971 = vmatprep.subr.bf16.mxu1 %v970_v5  ;;  %484 = vmatprep.mubr.f32.mxu0 %v1072_v7  ;;  %v1008_v22 = vpack.c.bf16 %v625_v20, %v624_v19  ;;  %v643_v25 = vld [vmem:[%s1507_s2 + $0x198] sm:$0xff]  ;;  %v594_v28 = vld [vmem:[%s1507_s2 + $0x10] sm:$0xff]  ;;  %v612_v33 = vld [vmem:[%s1507_s2 + $0xa0] sm:$0xff] }
  0x19   :  { %555 = vmatprep.mubr.f32.mxu1 %v1072_v7  ;;  %v640_v7 = vld [vmem:[%s1507_s2 + $0x180] sm:$0xff]  ;;  %v1010_v27 = vpack.c.bf16 %v643_v25, %v642_v24  ;;  %v595_v29 = vld [vmem:[%s1507_s2 + $0x18] sm:$0xff]  ;;  %v626_v30 = vld [vmem:[%s1507_s2 + $0x110] sm:$0xff] }
  0x1a   :  { %965 = vmatpush1.bf16.msra.mxu0 %v964_v9  ;;  %v1006_v17 = vpack.c.bf16 %v641_v14, %v640_v7  ;;  %v980_v31 = vpack.c.bf16 %v595_v29, %v594_v28  ;;  %v627_v32 = vld [vmem:[%s1507_s2 + $0x118] sm:$0xff]  ;;  %v613_v34 = vld [vmem:[%s1507_s2 + $0xa8] sm:$0xff]  ;;  %v644_v37 = vld [vmem:[%s1507_s2 + $0x1a0] sm:$0xff] }
  0x1b   :  { %973 = vmatpush1.bf16.msra.mxu1 %v972_v10  ;;  %975 = vmatprep.subr.bf16.mxu0 %v974_v13  ;;  %v1012_v35 = vpack.c.bf16 %v627_v32, %v626_v30  ;;  %v982_v36 = vpack.c.bf16 %v613_v34, %v612_v33  ;;  %v645_v38 = vld [vmem:[%s1507_s2 + $0x1a8] sm:$0xff]  ;;  %v596_v39 = vld [vmem:[%s1507_s2 + $0x20] sm:$0xff]  ;;  %v614_v45 = vld [vmem:[%s1507_s2 + $0xb0] sm:$0xff] }
  0x1c   :  { %1007 = vmatprep.subr.bf16.mxu1 %v1006_v17  ;;  %v1014_v40 = vpack.c.bf16 %v645_v38, %v644_v37  ;;  %v597_v41 = vld [vmem:[%s1507_s2 + $0x28] sm:$0xff]  ;;  %v628_v42 = vld [vmem:[%s1507_s2 + $0x120] sm:$0xff]  ;;  %v615_v46 = vld [vmem:[%s1507_s2 + $0xb8] sm:$0xff] }
  0x1d   :  { %854 = vmatmul.mubr.msk.f32.vlgmr.msra.gmra.mrb[4].mxu0 %vm132_vm0, %v1150_v26  ;;  %v629_v43 = vld [vmem:[%s1507_s2 + $0x128] sm:$0xff]  ;;  %v984_v44 = vpack.c.bf16 %v597_v41, %v596_v39  ;;  %v646_v47 = vld [vmem:[%s1507_s2 + $0x1b0] sm:$0xff]  ;;  %v986_v49 = vpack.c.bf16 %v615_v46, %v614_v45  ;;  %v647_v50 = vld [vmem:[%s1507_s2 + $0x1b8] sm:$0xff] }
  0x1e   :  { %855 = vmatmul.mubr.msk.f32.vlgmr.msra.gmra.mrb[4].mxu1 %vm132_vm0, %v1150_v26  ;;  %977 = vmatpush3.bf16.msra.mxu0 %v976_v18  ;;  %v978_v26 = vpack.c.bf16 %v611_v23, %v610_v21  ;;  %v1016_v48 = vpack.c.bf16 %v629_v43, %v628_v42  ;;  %v598_v51 = vld [vmem:[%s1507_s2 + $0x30] sm:$0xff]  ;;  %v599_v52 = vld [vmem:[%s1507_s2 + $0x38] sm:$0xff]  ;;  %v1018_v53 = vpack.c.bf16 %v647_v50, %v646_v47  ;;  %v616_v56 = vld [vmem:[%s1507_s2 + $0xc0] sm:$0xff]  ;;  %v72_v42 = vlaneseq }
  0x1f   :  { %1009 = vmatpush3.bf16.msra.mxu1 %v1008_v22  ;;  %v630_v54 = vld [vmem:[%s1507_s2 + $0x130] sm:$0xff]  ;;  %v631_v55 = vld [vmem:[%s1507_s2 + $0x138] sm:$0xff]  ;;  %v617_v57 = vld [vmem:[%s1507_s2 + $0xc8] sm:$0xff]  ;;  %v988_v60 = vpack.c.bf16 %v599_v52, %v598_v51 }
  0x20   :  { %979 = vmatprep.subr.bf16.mxu0 %v978_v26  ;;  %1011 = vmatprep.subr.bf16.mxu1 %v1010_v27  ;;  %v648_v58 = vld [vmem:[%s1507_s2 + $0x1c0] sm:$0xff]  ;;  %v649_v59 = vld [vmem:[%s1507_s2 + $0x1c8] sm:$0xff]  ;;  %v1020_v61 = vpack.c.bf16 %v631_v55, %v630_v54  ;;  %v990_v62 = vpack.c.bf16 %v617_v57, %v616_v56  ;;  %v618_v4 = vld [vmem:[%s1507_s2 + $0xd0] sm:$0xff]  ;;  %v1453_v43 = vshrl.u32 %v72_v42, 7 }
  0x21   :  { %v600_v63 = vld [vmem:[%s1507_s2 + $0x40] sm:$0xff]  ;;  %v601_v0 = vld [vmem:[%s1507_s2 + $0x48] sm:$0xff]  ;;  %v1022_v2 = vpack.c.bf16 %v649_v59, %v648_v58  ;;  %v619_v5 = vld [vmem:[%s1507_s2 + $0xd8] sm:$0xff] }
  0x22   :  { %981 = vmatpush3.bf16.msra.mxu0 %v980_v31  ;;  %v632_v1 = vld [vmem:[%s1507_s2 + $0x140] sm:$0xff]  ;;  %v633_v3 = vld [vmem:[%s1507_s2 + $0x148] sm:$0xff]  ;;  %v650_v6 = vld [vmem:[%s1507_s2 + $0x1d0] sm:$0xff]  ;;  %v992_v9 = vpack.c.bf16 %v601_v0, %v600_v63  ;;  %v994_v11 = vpack.c.bf16 %v619_v5, %v618_v4  ;;  %v90_v51 = vsub.s32 4, %v1453_v43  ;;  %v1466_v52 = vsub.s32 1, %v1453_v43 }
  0x23   :  { %1013 = vmatpush3.bf16.msra.mxu1 %v1012_v35  ;;  %983 = vmatprep.subr.bf16.mxu0 %v982_v36  ;;  %v651_v8 = vld [vmem:[%s1507_s2 + $0x1d8] sm:$0xff]  ;;  %v1024_v10 = vpack.c.bf16 %v633_v3, %v632_v1  ;;  %v602_v12 = vld [vmem:[%s1507_s2 + $0x50] sm:$0xff]  ;;  %v620_v18 = vld [vmem:[%s1507_s2 + $0xe0] sm:$0xff]  ;;  %v98_v55 = vsub.s32 6, %v1453_v43  ;;  %v94_v56 = vsub.s32 5, %v1453_v43  ;;  %v86_v57 = vsub.s32 3, %v1453_v43 }
  0x24   :  { %1015 = vmatprep.subr.bf16.mxu1 %v1014_v40  ;;  %v603_v7 = vld [vmem:[%s1507_s2 + $0x58] sm:$0xff]  ;;  %v1026_v13 = vpack.c.bf16 %v651_v8, %v650_v6  ;;  %v634_v14 = vld [vmem:[%s1507_s2 + $0x150] sm:$0xff]  ;;  %v621_v19 = vld [vmem:[%s1507_s2 + $0xe8] sm:$0xff]  ;;  %v102_v58 = vsub.s32 7, %v1453_v43 }
  0x25   :  { %v635_v15 = vld [vmem:[%s1507_s2 + $0x158] sm:$0xff]  ;;  %v996_v16 = vpack.c.bf16 %v603_v7, %v602_v12  ;;  %v652_v20 = vld [vmem:[%s1507_s2 + $0x1e0] sm:$0xff]  ;;  %v998_v21 = vpack.c.bf16 %v621_v19, %v620_v18  ;;  %v653_v22 = vld [vmem:[%s1507_s2 + $0x1e8] sm:$0xff] }
  0x26   :  { %985 = vmatpush3.bf16.msra.mxu0 %v984_v44  ;;  %v1028_v17 = vpack.c.bf16 %v635_v15, %v634_v14  ;;  %v604_v23 = vld [vmem:[%s1507_s2 + $0x60] sm:$0xff]  ;;  %v605_v24 = vld [vmem:[%s1507_s2 + $0x68] sm:$0xff]  ;;  %v1030_v25 = vpack.c.bf16 %v653_v22, %v652_v20  ;;  %v622_v30 = vld [vmem:[%s1507_s2 + $0xf0] sm:$0xff] }
  0x27   :  { %1017 = vmatpush3.bf16.msra.mxu1 %v1016_v48  ;;  %987 = vmatprep.subr.bf16.mxu0 %v986_v49  ;;  %v1000_v26 = vpack.c.bf16 %v605_v24, %v604_v23  ;;  %v636_v27 = vld [vmem:[%s1507_s2 + $0x160] sm:$0xff]  ;;  %v637_v28 = vld [vmem:[%s1507_s2 + $0x168] sm:$0xff]  ;;  %v623_v31 = vld [vmem:[%s1507_s2 + $0xf8] sm:$0xff]  ;;  %v1462_v48 = vsub.s32 0, %v1453_v43 }
  0x28   :  { %1019 = vmatprep.subr.bf16.mxu1 %v1018_v53  ;;  %v1032_v29 = vpack.c.bf16 %v637_v28, %v636_v27  ;;  %v654_v32 = vld [vmem:[%s1507_s2 + $0x1f0] sm:$0xff]  ;;  %v1002_v33 = vpack.c.bf16 %v623_v31, %v622_v30  ;;  %v655_v34 = vld [vmem:[%s1507_s2 + $0x1f8] sm:$0xff]  ;;  %v1469_v53 = vsub.s32 2, %v1453_v43 }
  0x29   :  { %v606_v35 = vld [vmem:[%s1507_s2 + $0x70] sm:$0xff]  ;;  %v607_v36 = vld [vmem:[%s1507_s2 + $0x78] sm:$0xff]  ;;  %v1034_v37 = vpack.c.bf16 %v655_v34, %v654_v32 }
  0x2a   :  { %989 = vmatpush3.bf16.msra.mxu0 %v988_v60  ;;  %v1004_v38 = vpack.c.bf16 %v607_v36, %v606_v35  ;;  %v638_v39 = vld [vmem:[%s1507_s2 + $0x170] sm:$0xff]  ;;  %v639_v40 = vld [vmem:[%s1507_s2 + $0x178] sm:$0xff] }
  0x2b   :  { %1021 = vmatpush3.bf16.msra.mxu1 %v1020_v61  ;;  %991 = vmatprep.subr.bf16.mxu0 %v990_v62  ;;  %v1036_v41 = vpack.c.bf16 %v639_v40, %v638_v39  ;;  %v847_v44 = vld [vmem:[%s1506_s1 + $0x180] ss:$8 sm:$0xf] }
  0x2c   :  { %1023 = vmatprep.subr.bf16.mxu1 %v1022_v2  ;;  %v848_v45 = vld [vmem:[%s1506_s1 + $0x180] ss:$8 sm:$0xf0] }
  0x2d   :  { %v67_v47 = vor.u32 %v848_v45, %v847_v44  ;;  %v849_v42 = vld [vmem:[%s1506_s1 + $0x1c0] ss:$8 sm:$0xf] }
  0x2e   :  { %993 = vmatpush3.bf16.msra.mxu0 %v992_v9  ;;  %v107_v43 = vrot.slane %v849_v42, %v1462_v48  ;;  %v111_v44 = vrot.slane %v849_v42, %v1466_v52  ;;  %v115_v45 = vrot.slane %v849_v42, %v1469_v53 }
  0x2f   :  { %1025 = vmatpush3.bf16.msra.mxu1 %v1024_v10  ;;  %995 = vmatprep.subr.bf16.mxu0 %v994_v11  ;;  %v75_v59 = vrot.slane %v67_v47, %v1462_v48  ;;  %v91_v60 = vrot.slane %v67_v47, %v90_v51  ;;  %v79_v61 = vrot.slane %v67_v47, %v1466_v52 }
  0x30   :  { %1027 = vmatprep.subr.bf16.mxu1 %v1026_v13  ;;  %v83_v62 = vrot.slane %v67_v47, %v1469_v53  ;;  %v99_v63 = vrot.slane %v67_v47, %v98_v55  ;;  %v95_v0 = vrot.slane %v67_v47, %v94_v56  ;;  %v87_v1 = vrot.slane %v67_v47, %v86_v57 }
  0x31   :  { %v103_v2 = vrot.slane %v67_v47, %v102_v58 }
  0x32   :  { %997 = vmatpush3.bf16.msra.mxu0 %v996_v16 }
  0x33   :  { %1029 = vmatpush3.bf16.msra.mxu1 %v1028_v17  ;;  %999 = vmatprep.subr.bf16.mxu0 %v998_v21 }
  0x34   :  { %1031 = vmatprep.subr.bf16.mxu1 %v1030_v25 }
  0x36   :  { %1001 = vmatpush3.bf16.msra.mxu0 %v1000_v26 }
  0x37   :  { %1033 = vmatpush3.bf16.msra.mxu1 %v1032_v29  ;;  %1003 = vmatprep.subr.bf16.mxu0 %v1002_v33 }
  0x38   :  { %1035 = vmatprep.subr.bf16.mxu1 %v1034_v37 }
  0x3a   :  { %1005 = vmatpush3.bf16.msra.mxu0 %v1004_v38 }
  0x3b   :  { %1037 = vmatpush3.bf16.msra.mxu1 %v1036_v41 }
  0xe0   :  { %v202_v46 = vpop.f32.mrb[0].mxu0 }
  0xe1   :  { %v204_v49 = vpop.f32.mrb[1].mxu0  ;;  %v273_v50 = vpop.f32.mrb[0].mxu1  ;;  %v203_v4 = vadd.f32 %v202_v46, %v75_v59  ;;  %v119_v46 = vrot.slane %v849_v42, %v86_v57 }
  0xe2   :  { %v275_v54 = vpop.f32.mrb[1].mxu1  ;;  %v205_v9 = vadd.f32 %v204_v49, %v79_v61  ;;  %v274_v10 = vadd.f32 %v273_v50, %v83_v62  ;;  %v656_v61 = vld [vmem:[%s1507_s2 + $0x200] sm:$0x7]  ;;  %s1073_s2 = smov [#allocation2]  }
  0xe3   :  { %v276_v13 = vadd.f32 %v275_v54, %v87_v1  ;;  %s839_s22 = sshll.u32 %s1073_s2, 4  ;;  %s840_s22 = int_to_ptr.vmem [resolvable:$true] %s839_s22 }
  0xe4   :  { %s1048_s23 = scalar_lea.vmem %s840_s22, 128  ;;  %p1053_p1 = scmp.lt.s32.totalorder %s840_s22, %s840_s22 }
  0xe5   :  { %p1049_p0 = scmp.ne.s32.totalorder %s840_s22, %s1048_s23  ;;  %p1054_p2 = scmp.lt.s32.totalorder %s1048_s23, %s1048_s23 }
  0xe7   :  { %p1055_p3 = por %p1054_p2, %p1053_p1 }
  0xe8   :  { %v344_v3 = vpop.f32.mrb[2].mxu0 }
  0xe9   :  { %v345_v5 = vadd.f32 %v344_v3, %v91_v60  ;;  %v415_v6 = vpop.f32.mrb[2].mxu1  ;;  %v346_v8 = vpop.f32.mrb[3].mxu0  ;;  %p1056_p4 = pnand %p1055_p3, %p1049_p0 }
  0xea   :  { %v416_v11 = vadd.f32 %v415_v6, %v99_v63  ;;  %v347_v12 = vadd.f32 %v346_v8, %v95_v0  ;;  %v417_v7 = vpop.f32.mrb[3].mxu1  ;;  %v660_v63 = vrot.slane %v656_v61, %v1462_v48 }
  0xeb   :  { %v562_v14 = vmul.f32 %v345_v5, %v203_v4  ;;  %v418_v15 = vadd.f32 %v417_v7, %v103_v2 }
  0xec   :  { %v564_v16 = vmul.f32 %v416_v11, %v274_v10  ;;  %v563_v17 = vmul.f32 %v347_v12, %v205_v9 }
  0xed   :  { %v565_v18 = vmul.f32 %v418_v15, %v276_v13 }
  0xee   :  { %v566_v19 = vadd.f32 %v563_v17, %v562_v14 }
  0xf0   :  { %v567_v20 = vadd.f32 %v566_v19, %v564_v16  ;;  %v486_v21 = vpop.f32.mrb[4].mxu0  ;;  %v824_v19 = vrot.slane %v656_v61, %v1466_v52 }
  0xf1   :  { %v488_v22 = vpop.f32.mrb[5].mxu0  ;;  %v557_v23 = vpop.f32.mrb[4].mxu1  ;;  %v487_v47 = vadd.f32 %v486_v21, %v107_v43  ;;  %v830_v21 = vrot.slane %v656_v61, %v1469_v53 }
  0xf2   :  { %v568_v24 = vadd.f32 %v567_v20, %v565_v18  ;;  %v559_v25 = vpop.f32.mrb[5].mxu1  ;;  %v489_v49 = vadd.f32 %v488_v22, %v111_v44  ;;  %v558_v50 = vadd.f32 %v557_v23, %v115_v45 }
  0xf3   :  { %v560_v51 = vadd.f32 %v559_v25, %v119_v46 }
  0xf4   :  { %v569_v26 = vmul.f32 0.35355338, %v568_v24 }
  0xf6   :  { %v570_v27 = vrot.slane %v569_v26, 4 }
  0xf8   :  { %v571_v28 = vmax.f32 %v569_v26, %v570_v27 }
  0xfa   :  { %v572_v29 = vrot.slane %v571_v28, 2 }
  0xfc   :  { %v573_v30 = vmax.f32 %v571_v28, %v572_v29 }
  0xfe   :  { %v574_v31 = vrot.slane %v573_v30, 1 }
 0x100   :  { %v575_v32 = vmax.f32 %v573_v30, %v574_v31 }
 0x102   :  { %v576_v33 = vsub.f32 %v569_v26, %v575_v32 }
 0x104   :  { %v577_v34 = vmul.f32 1.442695, %v576_v33 }
 0x106   :  { %1040 = vpow2.f32 %v577_v34 }
 0x110   :  { %v1041_v35 = vpop.eup %1040 }
 0x111   :  { %v579_v36 = vrot.slane %v1041_v35, 4 }
 0x113   :  { %v580_v37 = vadd.f32 %v1041_v35, %v579_v36 }
 0x115   :  { %v581_v38 = vrot.slane %v580_v37, 2 }
 0x117   :  { %v582_v39 = vadd.f32 %v581_v38, %v580_v37 }
 0x119   :  { %v583_v40 = vrot.slane %v582_v39, 1 }
 0x11b   :  { %v584_v41 = vadd.f32 %v583_v40, %v582_v39 }
 0x11d   :  { %1042 = vrcp.f32 %v584_v41 }
 0x127   :  { %v1043_v54 = vpop.eup %1042 }
 0x128   :  { %v587_v55 = vmul.f32 %v1043_v54, %v1041_v35 }
 0x12a   :  { %v588_v56 = vmul.f32 %v587_v55, %v487_v47  ;;  %v589_v58 = vmul.f32 %v587_v55, %v489_v49  ;;  %v590_v59 = vmul.f32 %v587_v55, %v558_v50  ;;  %v591_v60 = vmul.f32 %v587_v55, %v560_v51 }
 0x12c   :  { %725 = vmatprep.mubr.f32.mxu0 %v589_v58  ;;  %795 = vmatprep.mubr.f32.mxu1 %v591_v60 }
 0x12d   :  { %726 = vmatmul.mubr.f32.vlgmr.msra.gmra.mrb[6].mxu0 %v588_v56  ;;  %796 = vmatmul.mubr.f32.vlgmr.msra.gmra.mrb[6].mxu1 %v590_v59 }
 0x200   :  { %v888_v62 = vpop.f32.mrb[6].mxu0  ;;  %v923_v57 = vpop.f32.mrb[6].mxu1 }
 0x201   :  { %v889_v0 = vpop.f32.mrb[7].mxu0  ;;  %v924_v1 = vpop.f32.mrb[7].mxu1 }
 0x202   :  { %v890_v2 = vadd.f32 %v889_v0, %v888_v62  ;;  %v925_v3 = vadd.f32 %v924_v1, %v923_v57 }
 0x204   :  { %v728_v4 = vadd.f32 %v890_v2, %v660_v63 }
 0x206   :  { %v798_v5 = vadd.f32 %v925_v3, %v728_v4 }
 0x208   :  { %v801_v6 = vsel %vm132_vm0, %v798_v5, 0.0 }
 0x209   :  { %802 = vadd.xlane.f32.xlu0 %v801_v6 }
 0x296   :  { %v803_v8 = vpop.xlane.xlu0 %802 }
 0x297   :  { %v804_v9 = vmul.f32 0.03125, %v803_v8 }
 0x299   :  { %v805_v10 = vsub.f32 %v798_v5, %v804_v9 }
 0x29b   :  { %v806_v11 = vmul.f32 %v805_v10, %v805_v10  ;;  %v825_v20 = vmul.f32 %v824_v19, %v805_v10 }
 0x29d   :  { %v807_v12 = vsel %vm132_vm0, %v806_v11, 0.0 }
 0x29e   :  { %808 = vadd.xlane.f32.xlu0 %v807_v12 }
 0x32b   :  { %v809_v7 = vpop.xlane.xlu0 %808 }
 0x32c   :  { %v810_v13 = vmul.f32 0.032258064, %v809_v7 }
 0x32e   :  { %1044 = vrsqrt.f32 %v810_v13  ;;  %vm813_vm1 = vcmp.eq.f32.partialorder %v810_v13, inf  ;;  %v816_v15 = vand.u32 2147483648, %v810_v13  ;;  %vm815_vm2 = vcmp.eq.f32.partialorder %v810_v13, 0.0 }
 0x338   :  { %v1045_v48 = vpop.eup %1044 }
 0x339   :  { %v812_v14 = vmul.f32 %v1045_v48, %v810_v13 }
 0x33b   :  { %v814_v16 = vsel %vm813_vm1, %v810_v13, %v812_v14 }
 0x33c   :  { %v817_v17 = vsel %vm815_vm2, %v816_v15, %v814_v16 }
 0x33d   :  { %v818_v18 = vadd.f32 1e-06, %v817_v17 }
 0x33f   :  { %1046 = vrcp.f32 %v818_v18 }
 0x349   :  { %v1047_v22 = vpop.eup %1046 }
 0x34a   :  { %v826_v23 = vmul.f32 %v1047_v22, %v825_v20 }
 0x34c   :  { %v831_v24 = vadd.f32 %v830_v21, %v826_v23 }
 0x34e   :  { %832 = vst.msk [vmem:[#allocation2] sm:$0xff] %vm132_vm0, %v831_v24 }
 0x34f   :  { %1059 = shalt.err (!%p1056_p4)
}
 0x350   :  { %s1060_s26 = scalar_lea.hbm %s1508_s3, 128 }
 0x351   :  { %p1061_p5 = scmp.ne.s32.totalorder %s1508_s3, %s1060_s26  ;;  %p1064_p6 = scmp.lt.u32.totalorder %s1060_s26, %s1508_s3 }
 0x353   :  { %p1066_p7 = pnand %p1064_p6, %p1061_p5 }
 0x355   :  { %1069 = shalt.err (!%p1066_p7)
}
 0x356   :  { %842 = dma.vmem_to_hbm [thread:$0]  %s840_s22, 128, %s1508_s3, [#allocation3]  }
 0x357   :  { %1070 = dma.done.wait [#allocation3], 128  }
 0x358   :  { %1071 = vsyncadd [#allocation3], 4294967168 }
 0x359   :  { %846 = vsyncpa [#allocation3], 1 }

</bundles_post_ra>
